<compile_context>
chip_gen: v6e
topology: v6e:2x2x1
jax: 0.10.0
libtpu: 0.0.40
codegen_flags: <defaults>
</compile_context>

<pallas_src>
import functools

import jax
import jax.numpy as jnp
from jax import lax
from jax.experimental import pallas as pl
from jax.experimental.pallas import tpu as pltpu


def _round_up(v, m):
    return ((v + m - 1) // m) * m


def _default_tile(l_out, c_in, c_out, n, itemsize):
    # Per-grid-step working set: double-buffered main input tile (2*C_in x TL) and output
    # tile (C_out x TL). Budget kept well under v5e's 16 MiB scoped-VMEM default.
    per_col = (2 * (2 * c_in) + 2 * c_out) * itemsize
    budget = 8 * 1024 * 1024
    tl_vmem = max(128, (budget // per_col) // 128 * 128)
    tl = min(4096, _round_up(l_out, 128), tl_vmem)
    if n == 1 and l_out > 128:
        # Keep >= 2 steps along a "parallel" grid axis so v7x's second TensorCore has work.
        tl = min(tl, _round_up(pl.cdiv(l_out, 2), 128))
    return max(128, tl)


def _downsample_kernel(w01_ref, w2_ref, p_ref, h_ref, o_ref):
    """One (batch, L-tile) step of the strided conv + LeakyReLU.

    w01_ref: (C_out, 2*C_in)   resident: [W[:, :, 0] | W[:, :, 1]]
    w2_ref : (C_out, C_in)     resident:  W[:, :, 2]
    p_ref  : (1, 2*C_in, TL)   phase-major tile: rows [0:C)  -> x_pad[2*(j0+m)]
                                                 rows [C:2C) -> x_pad[2*(j0+m)+1]
    h_ref  : (1, 2*C_in, 128)  next 128 columns of P; column 0 of rows [0:C) = x_pad[2*(j0+TL)]
    o_ref  : (1, C_out, TL)
    """
    c_in = w2_ref.shape[1]

    pt = p_ref[0]                                    # (2*C_in, TL)

    # Tap k=2 pairs output column m with phase-0 column m+1; the column that runs off the
    # tile comes from the halo granule (first phase-0 column of the next tile).
    p0_shift = jnp.concatenate(
        [pt[:c_in, 1:], h_ref[0, :c_in, 0:1]], axis=-1)        # (C_in, TL)

    # Taps k=0,1 fused into a single MXU dot; tap k=2 as a second dot. f32 accumulation.
    y = (jnp.dot(w01_ref[...], pt, preferred_element_type=jnp.float32)
         + jnp.dot(w2_ref[...], p0_shift, preferred_element_type=jnp.float32))

    # Fused LeakyReLU(0.1) on the VPU; single lane-dense full-width store.
    y = jnp.where(y > 0, y, 0.1 * y)
    o_ref[0] = y.astype(o_ref.dtype)


@functools.partial(jax.jit, static_argnames=("tl",))
def downsample(x, weight, *, tl=None):
    """Conv1d(kernel=3, stride=2, padding=1, bias=False) + LeakyReLU(0.1).

    x: (N, C_in, L) ; weight: (C_out, C_in, 3). NCL layout, same as PyTorch.
    """
    n, c_in, l = x.shape
    c_out, c_in_w, k = weight.shape
    assert c_in_w == c_in and k == 3
    l_out = (l + 2 * 1 - 3) // 2 + 1          # stride 2, pad 1, kernel 3

    itemsize = jnp.dtype(x.dtype).itemsize
    if tl is None:
        tl = _default_tile(l_out, c_in, c_out, n, itemsize)
    tl = max(128, _round_up(int(tl), 128))
    grid_l = pl.cdiv(l_out, tl)
    w_cols = grid_l * tl + 128                # +1 lane granule so the halo block stays in range

    # Single fused prep pass: conv left-pad of 1, zero right-pad, even/odd split, phase-major
    # pack. P[n, p*C_in + c, m] = x_pad[n, c, 2m + p].
    xp = jnp.pad(x, ((0, 0), (0, 0), (1, 2 * w_cols - 1 - l)))
    p = xp.reshape(n, c_in, w_cols, 2).transpose(0, 3, 1, 2).reshape(n, 2 * c_in, w_cols)

    w01 = jnp.concatenate([weight[:, :, 0], weight[:, :, 1]], axis=1).astype(x.dtype)
    w2 = weight[:, :, 2].astype(x.dtype)

    # Raise the scoped-VMEM limit only if the tiles actually need it (large channel counts).
    est = (2 * (2 * c_in) * (tl + 128) + 2 * c_out * tl + 3 * c_out * c_in) * itemsize
    vlim = None if est <= 12 * 1024 * 1024 else min(int(2 * est), 48 * 1024 * 1024)

    out = pl.pallas_call(
        _downsample_kernel,
        out_shape=jax.ShapeDtypeStruct((n, c_out, l_out), x.dtype),
        grid_spec=pltpu.PrefetchScalarGridSpec(
            num_scalar_prefetch=0,
            grid=(n, grid_l),
            in_specs=[
                # tiny weights: constant index_map -> resident, no re-DMA churn
                pl.BlockSpec((c_out, 2 * c_in), lambda b, i: (0, 0)),
                pl.BlockSpec((c_out, c_in), lambda b, i: (0, 0)),
                # main phase-major tile for this (batch, L-tile)
                pl.BlockSpec((1, 2 * c_in, tl), lambda b, i: (b, 0, i)),
                # 128-lane halo granule: first columns of the next tile
                pl.BlockSpec((1, 2 * c_in, 128),
                             lambda b, i: (b, 0, (i + 1) * (tl // 128))),
            ],
            out_specs=pl.BlockSpec((1, c_out, tl), lambda b, i: (b, 0, i)),
        ),
        compiler_params=pltpu.CompilerParams(
            dimension_semantics=("parallel", "parallel"),
            vmem_limit_bytes=vlim),
    )(w01, w2, p, p)
    return out


def _reference(x, weight):
    # Pure-JAX reference: Conv1d(stride=2, pad=1, no bias) + LeakyReLU(0.1)
    y = lax.conv_general_dilated(
        x, weight,
        window_strides=(2,), padding=((1, 1),),
        dimension_numbers=("NCH", "OIH", "NCH"),
    )
    return jnp.where(y > 0, y, 0.1 * y)


if __name__ == "__main__":
    key = jax.random.PRNGKey(0)
    kx, kw, kx2 = jax.random.split(key, 3)

    # Small shapes consistent with DownSample(out_channel=4) on 1-D data.
    n, c, l = 2, 4, 16
    x = jax.random.normal(kx, (n, c, l), dtype=jnp.float32)
    weight = jax.random.normal(kw, (c, c, 3), dtype=jnp.float32) * 0.1

    out = downsample(x, weight)
    jax.block_until_ready(out)
    ref = _reference(x, weight)
    assert out.shape == ref.shape == (n, c, (l + 2 - 3) // 2 + 1)
    assert jnp.allclose(out, ref, atol=2e-3, rtol=2e-3), float(jnp.max(jnp.abs(out - ref)))

    # Module-scale input (h = 512): multi-tile L grid + halo-granule path (tl=128 -> 2 tiles).
    x2 = jax.random.normal(kx2, (n, c, 512), dtype=jnp.float32)
    out2 = downsample(x2, weight, tl=128)
    jax.block_until_ready(out2)
    ref2 = _reference(x2, weight)
    assert out2.shape == ref2.shape == (n, c, 256)
    assert jnp.allclose(out2, ref2, atol=2e-3, rtol=2e-3), float(jnp.max(jnp.abs(out2 - ref2)))

    # Same input with the default (single 256-wide) tile.
    out3 = downsample(x2, weight)
    jax.block_until_ready(out3)
    assert jnp.allclose(out3, ref2, atol=2e-3, rtol=2e-3), float(jnp.max(jnp.abs(out3 - ref2)))

    print("KERNEL_OK")
</pallas_src>

<mosaic_0001>
module attributes {stable_mosaic.version = 11 : i64} {
  func.func @_downsample_kernel(%arg0: i32, %arg1: i32, %arg2: memref<4x8xf32, #tpu.memory_space<vmem>>, %arg3: memref<4x4xf32, #tpu.memory_space<vmem>>, %arg4: memref<1x8x128xf32, #tpu.memory_space<vmem>>, %arg5: memref<1x8x128xf32, #tpu.memory_space<vmem>>, %arg6: memref<1x4x128xf32, #tpu.memory_space<vmem>>) attributes {dimension_semantics = [#tpu.dimension_semantics<parallel>, #tpu.dimension_semantics<parallel>], iteration_bounds = array<i64: 2, 1>, scalar_prefetch = 0 : i64, scratch_operands = 0 : i64, tpu.core_type = #tpu.core_type<tc>, window_params = [{pipeline_mode = #tpu.pipeline_mode<synchronous>, transform_indices = @transform_0, window_bounds = array<i64: 4, 8>}, {pipeline_mode = #tpu.pipeline_mode<synchronous>, transform_indices = @transform_1, window_bounds = array<i64: 4, 4>}, {transform_indices = @transform_2, window_bounds = array<i64: 1, 8, 128>}, {transform_indices = @transform_3, window_bounds = array<i64: 1, 8, 128>}, {transform_indices = @transform_4, window_bounds = array<i64: 1, 4, 128>}]} {
    %c0 = arith.constant 0 : index
    %c0_0 = arith.constant 0 : index
    %c0_1 = arith.constant 0 : index
    %0 = vector.load %arg4[%c0, %c0_0, %c0_1] : memref<1x8x128xf32, #tpu.memory_space<vmem>>, vector<1x8x128xf32>
    %1 = vector.shape_cast %0 : vector<1x8x128xf32> to vector<8x128xf32>
    %2 = vector.extract_strided_slice %1 {offsets = [0, 1], sizes = [4, 127], strides = [1, 1]} : vector<8x128xf32> to vector<4x127xf32>
    %c0_2 = arith.constant 0 : index
    %c0_3 = arith.constant 0 : index
    %c0_4 = arith.constant 0 : index
    %3 = vector.load %arg5[%c0_2, %c0_3, %c0_4] : memref<1x8x128xf32, #tpu.memory_space<vmem>>, vector<1x4x1xf32>
    %4 = vector.shape_cast %3 : vector<1x4x1xf32> to vector<4x1xf32>
    %5 = tpu.concatenate %2, %4 in 1 : vector<4x127xf32>, vector<4x1xf32> -> vector<4x128xf32>
    %c0_5 = arith.constant 0 : index
    %c0_6 = arith.constant 0 : index
    %6 = vector.load %arg2[%c0_5, %c0_6] : memref<4x8xf32, #tpu.memory_space<vmem>>, vector<4x8xf32>
    %cst = arith.constant dense<0.000000e+00> : vector<4x128xf32>
    %7 = tpu.matmul %6, %1, %cst {dimension_numbers = #tpu.dot_dimension_numbers<[1], [0], [0], [1], [0, 0, 1, 1], [], []>} : vector<4x8xf32>, vector<8x128xf32>, vector<4x128xf32> -> vector<4x128xf32>
    %c0_7 = arith.constant 0 : index
    %c0_8 = arith.constant 0 : index
    %8 = vector.load %arg3[%c0_7, %c0_8] : memref<4x4xf32, #tpu.memory_space<vmem>>, vector<4x4xf32>
    %cst_9 = arith.constant dense<0.000000e+00> : vector<4x128xf32>
    %9 = tpu.matmul %8, %5, %cst_9 {dimension_numbers = #tpu.dot_dimension_numbers<[1], [0], [0], [1], [0, 0, 1, 1], [], []>} : vector<4x4xf32>, vector<4x128xf32>, vector<4x128xf32> -> vector<4x128xf32>
    %10 = arith.addf %7, %9 : vector<4x128xf32>
    %cst_10 = arith.constant 0.000000e+00 : f32
    %11 = vector.broadcast %cst_10 : f32 to vector<4x128xf32>
    %12 = arith.cmpf ogt, %10, %11 : vector<4x128xf32>
    %cst_11 = arith.constant 1.000000e-01 : f32
    %13 = vector.broadcast %cst_11 : f32 to vector<4x128xf32>
    %14 = arith.mulf %13, %10 : vector<4x128xf32>
    %15 = arith.select %12, %10, %14 : vector<4x128xi1>, vector<4x128xf32>
    %c0_12 = arith.constant 0 : index
    %c0_13 = arith.constant 0 : index
    %c0_14 = arith.constant 0 : index
    %16 = vector.load %arg6[%c0_12, %c0_13, %c0_14] : memref<1x4x128xf32, #tpu.memory_space<vmem>>, vector<1x4x128xf32>
    %17 = vector.shape_cast %16 : vector<1x4x128xf32> to vector<4x128xf32>
    %18 = vector.shape_cast %15 : vector<4x128xf32> to vector<1x4x128xf32>
    tpu.vector_store %arg6[%c0_12, %c0_13, %c0_14], %18 {strides = array<i32>} : memref<1x4x128xf32, #tpu.memory_space<vmem>>, vector<1x4x128xf32>,
    return
  }
  func.func @transform_0(%arg0: i32, %arg1: i32) -> (i32, i32) {
    %c0_i32 = arith.constant 0 : i32
    %c0_i32_0 = arith.constant 0 : i32
    %c0_i32_1 = arith.constant 0 : i32
    return %c0_i32, %c0_i32_0 : i32, i32
  }
  func.func @transform_1(%arg0: i32, %arg1: i32) -> (i32, i32) {
    %c0_i32 = arith.constant 0 : i32
    %c0_i32_0 = arith.constant 0 : i32
    %c0_i32_1 = arith.constant 0 : i32
    return %c0_i32, %c0_i32_0 : i32, i32
  }
  func.func @transform_2(%arg0: i32, %arg1: i32) -> (i32, i32, i32) {
    %c0_i32 = arith.constant 0 : i32
    %c0_i32_0 = arith.constant 0 : i32
    return %arg0, %c0_i32, %arg1 : i32, i32, i32
  }
  func.func @transform_3(%arg0: i32, %arg1: i32) -> (i32, i32, i32) {
    %c1_i32 = arith.constant 1 : i32
    %0 = arith.addi %arg1, %c1_i32 : i32
    %c1_i32_0 = arith.constant 1 : i32
    %1 = arith.muli %0, %c1_i32_0 : i32
    %c0_i32 = arith.constant 0 : i32
    %c0_i32_1 = arith.constant 0 : i32
    return %arg0, %c0_i32, %1 : i32, i32, i32
  }
  func.func @transform_4(%arg0: i32, %arg1: i32) -> (i32, i32, i32) {
    %c0_i32 = arith.constant 0 : i32
    %c0_i32_0 = arith.constant 0 : i32
    return %arg0, %c0_i32, %arg1 : i32, i32, i32
  }
}

</mosaic_0001>

<bundles_post_ra>
// kernel: downsample.1
= control target key start
LH: loop header
LB: loop body
LE: loop exit
PB: predicated region body
PF: predicated region fallthrough
CT: control target
= control target key end

     0   :  { %9 = vsyncpa [#allocation3], 0  ;;  %s850_s0 = inlined_call_operand.vmem [shape: f32[4,8], index: 0, kind: input, shape index: {}]   ;;  %s851_s1 = inlined_call_operand.vmem [shape: f32[4,4], index: 1, kind: input, shape index: {}]   ;;  %s852_s2 = inlined_call_operand.vmem [shape: f32[2,8,256], index: 2, kind: input, shape index: {}, may-alias: {2,3}]   ;;  %s853_s3 = inlined_call_operand.vmem [shape: f32[2,8,256], index: 3, kind: input, shape index: {}, may-alias: {2,3}]   ;;  %s854_s4 = inlined_call_operand.hbm [shape: f32[2,4,8], index: 4, kind: output, shape index: {}]  }
   0x1   :  { %11 = vsyncpa [#allocation3 + $0x1], 0  ;;  %s736_s15 = smov 0   ;;  %s738_s16 = smov 0  }
   0x2   :  { %s740_s17 = smov 0   ;;  %s742_s18 = smov 0  }
   0x3   :  { %s744_s19 = smov 0   ;;  %s746_s20 = smov 0  }
   0x4 LB: > { %s536_s21 = sadd.s32 4294967295, %s705_s20   ;;  %s537_s22 = sadd.s32 4294967294, %s705_s20   ;;  %s705_s20 = sphi %s746_s20, %s17_s20   ;;  %s701_s19 = sphi %s744_s19, %s861_s19   ;;  %s697_s18 = sphi %s742_s18, %s860_s18   ;;  %s693_s17 = sphi %s740_s17, %s859_s17   ;;  %s689_s16 = sphi %s738_s16, %s858_s16   ;;  %s685_s15 = sphi %s736_s15, %s857_s15  }
   0x5   : > { %s29_s23 = sadd.s32 1, %s701_s19  ;;  %s138_s24 = sadd.s32 1, %s693_s17 }
   0x6   : > { %p31_p0 = scmp.ge.s32.totalorder %s29_s23, 2  ;;  %p148_p1 = scmp.ne.s32.totalorder %s693_s17, %s689_s16 }
   0x7   : > { %p149_p2 = scmp.eq.s32.totalorder %s536_s21, 1  ;;  %p154_p3 = scmp.ne.s32.totalorder %s689_s16, %s685_s15 }
   0x8   : > { %s863_s23 = smov (%p31_p0, %s29_s23), 0  ;;  %p155_p5 = scmp.eq.s32.totalorder %s537_s22, 1 }
   0x9   : > { %p776_p4 = por %p149_p2, %p148_p1  ;;  %s133_s26 = ssub.s32 %s701_s19, %s863_s23 }
   0xa   : > { %p540_p6 = scmp.ge.s32.totalorder %s705_s20, 1  ;;  %p136_p7 = scmp.eq.s32.totalorder %s133_s26, 0 }
   0xb   : > { %p783_p8 = por %p155_p5, %p154_p3  ;;  %p203_p9 = scmp.lt.s32.totalorder %s705_s20, 3 }
   0xc   : > { %s789_s28 = scalar_select %p136_p7, %s693_s17, %s138_s24  }
   0xd   : > { %p204_p10 = pnand %p540_p6, %p203_p9 }
   0xe   : > { %p241_p11 = scmp.lt.s32.totalorder (!%p204_p10), %s697_s18, 1  ;;  %s709_s14 = smov (!%p204_p10), 127  }
   0xf   : > { %207 = sbr.rel (%p204_p10) target bundleno = 357 (0x165), region = 36  ;;  %s238_s24 = sand.u32 (!%p204_p10), 1, %s689_s16  }
  0x10   : > { %s541_s26 = sshll.u32 (!%p204_p10), %s238_s24, 2  ;;  %s430_s9 = scalar_lea.sflag (!%p204_p10), [#allocation3], %s238_s24 }
  0x14   : > { %v707_v0 = vmov 0.0   ;;  %vm708_vm0 = vmmov 0   ;;  %s242_s29 = scalar_select %p241_p11, %s697_s18, 1  ;;  %v271_v1 = vld [vmem:[%s850_s0] sm:$0xf]  ;;  %vm351_vm1 = vcmask 64512  }
  0x15   : > { %566 = vmatprep.subr.mxu1 %v707_v0  ;;  %568 = vmatprep.mubr.msk.f32.mxu1 %vm708_vm0, %v707_v0  ;;  %vm269_vm2 = vcmask 1039360   ;;  %vm277_vm3 = vcmask 1043456   ;;  %v272_v6 = vld [vmem:[%s851_s1] sm:$0xf]  ;;  %vm273_vm4 = vcmask 31744  }
  0x16   : > { %561 = vmatprep.subr.mxu0 %v707_v0  ;;  %563 = vmatprep.mubr.msk.f32.mxu0 %vm708_vm0, %v707_v0  ;;  %s553_s30 = sshll.u32 %s242_s29, 4  ;;  %s550_s29 = sshll.u32 %s697_s18, 6 }
  0x17   : > { %s248_s7 = scalar_lea.vmem %s852_s2, %s553_s30  ;;  %s555_s8 = sadd.s32 8, %s553_s30 }
  0x18   : > { %v259_v2 = vld [vmem:[%s248_s7] sm:$0xff]  ;;  %s257_s13 = scalar_lea.vmem %s853_s3, %s555_s8  ;;  %s240_s30 = scalar_lea.vmem [#allocation2], %s541_s26 }
  0x19   : > { %262 = vrot.lane.b32.xlu0 %v259_v2, %s709_s14  ;;  %567 = vmatpush3.msra.mxu1 %v259_v2  ;;  %v260_v3 = vld [vmem:[%s257_s13] sm:$0xf]  ;;  %s444_s5 = sshll.u32 %s240_s30, 4  ;;  %s810_s8 = scalar_lea.hbm %s854_s4, %s550_s29  ;;  %s445_s5 = int_to_ptr.vmem [resolvable:$true] %s444_s5 }
  0x1a   : > { %569 = vmatmul.mubr.msk.f32.vlgmr.msra.gmra.mxu1 %vm351_vm1, %v271_v1  ;;  %s629_s10 = scalar_lea.vmem %s445_s5, 64  ;;  %s710_s18 = smov [#allocation2]  }
  0x1b   : > { %p630_p12 = scmp.ne.s32.totalorder %s445_s5, %s629_s10  ;;  %s633_s11 = sshll.u32 %s710_s18, 4  ;;  %s634_s11 = int_to_ptr.vmem [resolvable:$false] %s633_s11 }
  0x1c   : > { %s635_s12 = scalar_lea.vmem %s634_s11, 128  ;;  %p636_p1 = scmp.lt.s32.totalorder %s445_s5, %s634_s11 }
  0x1d   : > { %266 = vrot.lane.b32.xlu0 %v260_v3, %s709_s14  ;;  %p631_p13 = pnand %p630_p12, %p776_p4  ;;  %p637_p2 = scmp.lt.s32.totalorder %s635_s12, %s629_s10 }
  0x1f   : > { %p632_p0 = pneg %p631_p13  ;;  %p638_p3 = por %p637_p2, %p636_p1 }
  0x21   : > { %p639_p5 = pnand %p638_p3, %p632_p0 }
  0x8b   : > { %v263_v4 = vpop.permute.xlu0 %262 }
  0x8f   : > { %v267_v5 = vpop.permute.xlu0 %266 }
  0x90   : > { %v270_v7 = vsel %vm269_vm2, %v263_v4, %v267_v5 }
  0x91   : > { %562 = vmatpush3.msk.msra.mxu0 %vm277_vm3, %v270_v7 }
  0x92   : > { %564 = vmatmul.mubr.msk.f32.vlgmr.msra.gmra.mxu0 %vm273_vm4, %v272_v6 }
  0xda   : > { %v421_v8 = vpop.f32.mrf.mxu1 }
  0xdc   : > { %v570_v9 = vpop.f32.mrf.mxu1 }
 0x152   : > { %v347_v10 = vpop.f32.mrf.mxu0 }
 0x153   : > { %v422_v11 = vadd.f32 %v421_v8, %v347_v10 }
 0x154   : > { %v565_v12 = vpop.f32.mrf.mxu0 }
 0x155   : > { %vm425_vm5 = vcmp.gt.f32.partialorder %v422_v11, 0.0  ;;  %v426_v13 = vmul.f32 0.1, %v422_v11 }
 0x157   : > { %v427_v14 = vsel %vm425_vm5, %v422_v11, %v426_v13 }
 0x158   : > { %428 = vst [vmem:[%s240_s30] sm:$0xf] %v427_v14 }
 0x159   : > { %642 = shalt.err (!%p639_p5)
}
 0x15a   : > { %s643_s13 = scalar_lea.hbm %s810_s8, 64  ;;  %s647_s22 = scalar_lea.hbm %s854_s4, 128 }
 0x15b   : > { %p644_p6 = scmp.ne.s32.totalorder %s810_s8, %s643_s13  ;;  %p648_p10 = scmp.lt.s32.totalorder %s810_s8, %s854_s4 }
 0x15c   : > { %p649_p11 = scmp.lt.s32.totalorder %s647_s22, %s643_s13 }
 0x15d   : > { %p645_p7 = pnand %p644_p6, %p776_p4 }
 0x15e   : > { %p650_p12 = por %p649_p11, %p648_p10 }
 0x15f   : > { %p646_p9 = pneg %p645_p7 }
 0x161   : > { %p651_p13 = pnand %p650_p12, %p646_p9 }
 0x163   : > { %654 = shalt.err (!%p651_p13)
}
 0x164   : > { %571 = dma.vmem_to_hbm [thread:$0]  (%p776_p4), %s445_s5, 64, %s810_s8, %s430_s9  }
 0x165 PF: > { %p577_p0 = scmp.ge.s32.totalorder %s705_s20, 2  ;;  %s456_s29 = sand.u32 1, %s685_s15  }
 0x166   : > { %s457_s30 = scalar_lea.sflag [#allocation3], %s456_s29 }
 0x167   : > { %p574_p1 = pnand %p577_p0, %p783_p8 }
 0x169   : > { %p575_p2 = pneg %p574_p1 }
 0x16b   : > { %680 = dma.done.wait (%p575_p2), %s457_s30, 64  }
 0x16c   : > { %682 = vsyncadd (%p575_p2), %s457_s30, 4294967232  ;;  %s17_s20 = sadd.s32 1, %s705_s20   ;;  %s857_s15 = smov %s689_s16 }
 0x16d   : > { %p14_p3 = scmp.ge.s32.totalorder %s17_s20, 4   ;;  %s858_s16 = smov %s693_s17 }
 0x16e   : > { %s859_s17 = smov %s789_s28  ;;  %s860_s18 = smov %s701_s19 }
 0x16f   : > { %s861_s19 = smov %s863_s23  ;;  %16 = sbr.rel (!%p14_p3) target bundleno = 4 (0x4), region = 74 }
 0x174   :  { %462 = vsyncpa [#allocation3], 1 }
 0x175   :  { %464 = vsyncpa [#allocation3 + $0x1], 1 }

</bundles_post_ra>
